<compile_context>
chip_gen: v6e
topology: v6e:2x2x1
jax: 0.10.0
libtpu: 0.0.40
codegen_flags: <defaults>
</compile_context>

<pallas_src>
import functools

import jax
import jax.numpy as jnp
from jax.experimental import pallas as pl
from jax.experimental.pallas import tpu as pltpu


def _contract_kernel(x_ref, o_ref, *, acc_dtype, mm_precision):
    # x_ref : (C, TH, W)            input tile (batch dim squeezed away)
    # o_ref : (C*4, TH//2, W//2)    output tile
    C, TH, W = x_ref.shape
    _, THo, Wo = o_ref.shape
    s = 2

    # Column (W) de-interleave selectors, built in-kernel (no HBM input, no double-buffered
    # VMEM constant).  sel_j[w, wo] = 1  iff  w == s * wo + j   (exact 0/1 permutation).
    w_idx = jax.lax.broadcasted_iota(jnp.int32, (W, Wo), 0)
    wo_idx = jax.lax.broadcasted_iota(jnp.int32, (W, Wo), 1)
    sels = tuple((w_idx == s * wo_idx + j).astype(x_ref.dtype) for j in range(s))

    for i in range(s):                                       # row parity, static unroll
        # Rows s*r + i for r in [0, THo): sublane-strided read (lane stride stays 1).
        part = x_ref[:, pl.ds(i, THo, stride=s), :]          # (C, THo, W)
        flat = part.reshape(C * THo, W)
        for j in range(s):                                   # column parity
            # Lane de-interleave on the MXU; the result is already lane-dense (width Wo), so
            # each store is one dense static channel-block write (no offset-Wo lane slice).
            res = jnp.dot(flat, sels[j],
                          preferred_element_type=acc_dtype,
                          precision=mm_precision)
            o_ref[(s * i + j) * C:(s * i + j + 1) * C, :, :] = (
                res.reshape(C, THo, Wo).astype(o_ref.dtype))


def _vmem_capacity_bytes():
    try:
        return int(pltpu.get_tpu_info().vmem_capacity_bytes)
    except Exception:
        return 64 * 1024 * 1024  # conservative fallback (v7x per-TC VMEM)


def _pick_th(C, H, W, itemsize, budget_bytes):
    """Largest 16-multiple H tile dividing H whose double-buffered in+out blocks fit budget."""
    if H % 16 == 0:
        cands = [th for th in range(16, H + 1, 16) if H % th == 0]
        fitting = [th for th in cands if 4 * C * th * W * itemsize <= budget_bytes]
        return max(fitting) if fitting else min(cands)
    # TODO(synk): pad / mask the H tail instead of a full-extent block when H % 16 != 0.
    return H


def contract(x, gain=2):
    # TODO(synk): selector construction / channel packing below assume gain == 2 (module default).
    assert gain == 2, "only gain=2 implemented"
    if not jnp.issubdtype(x.dtype, jnp.floating):
        raise NotImplementedError(
            f"Contract Pallas kernel supports float dtypes only (MXU selection matmul); "
            f"got {x.dtype}")

    B, C, H, W = x.shape
    s = gain
    assert H % s == 0 and W % s == 0
    Ho, Wo = H // s, W // s

    itemsize = jnp.dtype(x.dtype).itemsize
    cap = _vmem_capacity_bytes()
    budget = (cap * 2) // 5                       # ~40% of VMEM for the double-buffered tiles
    TH = _pick_th(C, H, W, itemsize, budget)
    THo = TH // s
    n_h = H // TH

    tile_bytes = 4 * C * TH * W * itemsize        # 2 x (input block + output block)
    vmem_limit = int(min(cap * 3 // 4, max(tile_bytes + (4 << 20), 32 << 20)))

    # Exactness of the 0/1 selection matmul:
    #  - f32 inputs: force full-f32 contraction (pure data movement must be exact).
    #  - bf16 inputs: one non-zero term per output, bf16 accumulate/store is exact.
    if x.dtype == jnp.float32:
        acc_dtype, mm_precision = jnp.float32, jax.lax.Precision.HIGHEST
    elif x.dtype == jnp.bfloat16:
        acc_dtype, mm_precision = jnp.bfloat16, None
    else:
        acc_dtype, mm_precision = jnp.float32, None

    kernel = functools.partial(_contract_kernel, acc_dtype=acc_dtype,
                               mm_precision=mm_precision)

    cost = pl.CostEstimate(
        flops=2 * B * C * H * W * W,                       # 4 selection matmuls per tile
        transcendentals=0,
        bytes_accessed=2 * B * C * H * W * itemsize,       # read once + write once
    )

    return pl.pallas_call(
        kernel,
        out_shape=jax.ShapeDtypeStruct((B, C * s * s, Ho, Wo), x.dtype),
        grid_spec=pltpu.PrefetchScalarGridSpec(
            num_scalar_prefetch=0,
            grid=(B, n_h),
            in_specs=[
                pl.BlockSpec((None, C, TH, W), lambda b, t: (b, 0, t, 0)),
            ],
            out_specs=pl.BlockSpec((None, C * s * s, THo, Wo), lambda b, t: (b, 0, t, 0)),
        ),
        compiler_params=pltpu.CompilerParams(
            dimension_semantics=("parallel", "parallel"),
            vmem_limit_bytes=vmem_limit,
        ),
        cost_estimate=cost,
    )(x)


def contract_ref(x, gain=2):
    # Pure-JAX mirror of the PyTorch forward (for correctness check).
    b, c, h, w = x.shape
    s = gain
    y = x.reshape(b, c, h // s, s, w // s, s)
    y = jnp.transpose(y, (0, 3, 5, 1, 2, 4))
    return y.reshape(b, c * s * s, h // s, w // s)


if __name__ == "__main__":
    key0, key1 = jax.random.split(jax.random.PRNGKey(0), 2)

    # Primary small test.
    B, C, H, W = 2, 4, 16, 16
    x = jax.random.normal(key0, (B, C, H, W), dtype=jnp.float32)
    out = jax.block_until_ready(contract(x, gain=2))
    ref = jax.block_until_ready(contract_ref(x, gain=2))
    assert out.shape == (B, C * 4, H // 2, W // 2), out.shape
    assert jnp.allclose(out, ref, atol=1e-6, rtol=1e-6), float(jnp.max(jnp.abs(out - ref)))

    # Non-power-of-two channels / width.
    x2 = jax.random.normal(key1, (1, 3, 32, 24), dtype=jnp.float32)
    out2 = jax.block_until_ready(contract(x2, gain=2))
    ref2 = contract_ref(x2, gain=2)
    assert out2.shape == (1, 12, 16, 12), out2.shape
    assert jnp.allclose(out2, ref2, atol=1e-6, rtol=1e-6), float(jnp.max(jnp.abs(out2 - ref2)))

    print("KERNEL_OK")
</pallas_src>

<mosaic_0001>
module attributes {stable_mosaic.version = 11 : i64} {
  func.func @_contract_kernel(%arg0: i32, %arg1: i32, %arg2: memref<1x4x16x16xf32, #tpu.memory_space<vmem>>, %arg3: memref<1x16x8x8xf32, #tpu.memory_space<vmem>>) attributes {dimension_semantics = [#tpu.dimension_semantics<parallel>, #tpu.dimension_semantics<parallel>], iteration_bounds = array<i64: 2, 1>, scalar_prefetch = 0 : i64, scratch_operands = 0 : i64, tpu.core_type = #tpu.core_type<tc>, window_params = [{transform_indices = @transform_0, window_bounds = array<i64: 1, 4, 16, 16>}, {transform_indices = @transform_1, window_bounds = array<i64: 1, 16, 8, 8>}]} {
    %0 = tpu.iota {dimensions = array<i32: 0>} : vector<16x8xi32>
    %1 = tpu.iota {dimensions = array<i32: 1>} : vector<16x8xi32>
    %c2_i32 = arith.constant 2 : i32
    %2 = vector.broadcast %c2_i32 : i32 to vector<16x8xi32>
    %3 = arith.muli %2, %1 : vector<16x8xi32>
    %c0_i32 = arith.constant 0 : i32
    %4 = vector.broadcast %c0_i32 : i32 to vector<16x8xi32>
    %5 = arith.addi %3, %4 : vector<16x8xi32>
    %6 = arith.cmpi eq, %0, %5 : vector<16x8xi32>
    %7 = arith.extui %6 : vector<16x8xi1> to vector<16x8xi32>
    %8 = arith.sitofp %7 : vector<16x8xi32> to vector<16x8xf32>
    %c2_i32_0 = arith.constant 2 : i32
    %9 = vector.broadcast %c2_i32_0 : i32 to vector<16x8xi32>
    %10 = arith.muli %9, %1 : vector<16x8xi32>
    %c1_i32 = arith.constant 1 : i32
    %11 = vector.broadcast %c1_i32 : i32 to vector<16x8xi32>
    %12 = arith.addi %10, %11 : vector<16x8xi32>
    %13 = arith.cmpi eq, %0, %12 : vector<16x8xi32>
    %14 = arith.extui %13 : vector<16x8xi1> to vector<16x8xi32>
    %15 = arith.sitofp %14 : vector<16x8xi32> to vector<16x8xf32>
    %c0 = arith.constant 0 : index
    %c0_1 = arith.constant 0 : index
    %c0_2 = arith.constant 0 : index
    %c0_3 = arith.constant 0 : index
    %16 = tpu.strided_load %arg2[%c0, %c0_1, %c0_2, %c0_3] {strides = array<i32: 1, 1, 2, 1>} : memref<1x4x16x16xf32, #tpu.memory_space<vmem>>, vector<1x4x8x16xf32>
    %17 = vector.shape_cast %16 : vector<1x4x8x16xf32> to vector<4x8x16xf32>
    %18 = vector.shape_cast %17 : vector<4x8x16xf32> to vector<32x16xf32>
    %cst = arith.constant dense<0.000000e+00> : vector<32x8xf32>
    %19 = tpu.matmul %18, %8, %cst {dimension_numbers = #tpu.dot_dimension_numbers<[1], [0], [0], [1], [0, 0, 1, 1], [], []>, precision = #tpu.contract_precision<fp32>} : vector<32x16xf32>, vector<16x8xf32>, vector<32x8xf32> -> vector<32x8xf32>
    %20 = vector.shape_cast %19 : vector<32x8xf32> to vector<4x8x8xf32>
    %c0_4 = arith.constant 0 : index
    %c0_5 = arith.constant 0 : index
    %c0_6 = arith.constant 0 : index
    %c0_7 = arith.constant 0 : index
    %21 = vector.load %arg3[%c0_4, %c0_5, %c0_6, %c0_7] : memref<1x16x8x8xf32, #tpu.memory_space<vmem>>, vector<1x4x8x8xf32>
    %22 = vector.shape_cast %21 : vector<1x4x8x8xf32> to vector<4x8x8xf32>
    %23 = vector.shape_cast %20 : vector<4x8x8xf32> to vector<1x4x8x8xf32>
    tpu.vector_store %arg3[%c0_4, %c0_5, %c0_6, %c0_7], %23 {strides = array<i32>} : memref<1x16x8x8xf32, #tpu.memory_space<vmem>>, vector<1x4x8x8xf32>,
    %cst_8 = arith.constant dense<0.000000e+00> : vector<32x8xf32>
    %24 = tpu.matmul %18, %15, %cst_8 {dimension_numbers = #tpu.dot_dimension_numbers<[1], [0], [0], [1], [0, 0, 1, 1], [], []>, precision = #tpu.contract_precision<fp32>} : vector<32x16xf32>, vector<16x8xf32>, vector<32x8xf32> -> vector<32x8xf32>
    %25 = vector.shape_cast %24 : vector<32x8xf32> to vector<4x8x8xf32>
    %c0_9 = arith.constant 0 : index
    %c4 = arith.constant 4 : index
    %c0_10 = arith.constant 0 : index
    %c0_11 = arith.constant 0 : index
    %26 = vector.load %arg3[%c0_9, %c4, %c0_10, %c0_11] : memref<1x16x8x8xf32, #tpu.memory_space<vmem>>, vector<1x4x8x8xf32>
    %27 = vector.shape_cast %26 : vector<1x4x8x8xf32> to vector<4x8x8xf32>
    %28 = vector.shape_cast %25 : vector<4x8x8xf32> to vector<1x4x8x8xf32>
    tpu.vector_store %arg3[%c0_9, %c4, %c0_10, %c0_11], %28 {strides = array<i32>} : memref<1x16x8x8xf32, #tpu.memory_space<vmem>>, vector<1x4x8x8xf32>,
    %c0_12 = arith.constant 0 : index
    %c0_13 = arith.constant 0 : index
    %c1 = arith.constant 1 : index
    %c0_14 = arith.constant 0 : index
    %29 = tpu.strided_load %arg2[%c0_12, %c0_13, %c1, %c0_14] {strides = array<i32: 1, 1, 2, 1>} : memref<1x4x16x16xf32, #tpu.memory_space<vmem>>, vector<1x4x8x16xf32>
    %30 = vector.shape_cast %29 : vector<1x4x8x16xf32> to vector<4x8x16xf32>
    %31 = vector.shape_cast %30 : vector<4x8x16xf32> to vector<32x16xf32>
    %cst_15 = arith.constant dense<0.000000e+00> : vector<32x8xf32>
    %32 = tpu.matmul %31, %8, %cst_15 {dimension_numbers = #tpu.dot_dimension_numbers<[1], [0], [0], [1], [0, 0, 1, 1], [], []>, precision = #tpu.contract_precision<fp32>} : vector<32x16xf32>, vector<16x8xf32>, vector<32x8xf32> -> vector<32x8xf32>
    %33 = vector.shape_cast %32 : vector<32x8xf32> to vector<4x8x8xf32>
    %c0_16 = arith.constant 0 : index
    %c8 = arith.constant 8 : index
    %c0_17 = arith.constant 0 : index
    %c0_18 = arith.constant 0 : index
    %34 = vector.load %arg3[%c0_16, %c8, %c0_17, %c0_18] : memref<1x16x8x8xf32, #tpu.memory_space<vmem>>, vector<1x4x8x8xf32>
    %35 = vector.shape_cast %34 : vector<1x4x8x8xf32> to vector<4x8x8xf32>
    %36 = vector.shape_cast %33 : vector<4x8x8xf32> to vector<1x4x8x8xf32>
    tpu.vector_store %arg3[%c0_16, %c8, %c0_17, %c0_18], %36 {strides = array<i32>} : memref<1x16x8x8xf32, #tpu.memory_space<vmem>>, vector<1x4x8x8xf32>,
    %cst_19 = arith.constant dense<0.000000e+00> : vector<32x8xf32>
    %37 = tpu.matmul %31, %15, %cst_19 {dimension_numbers = #tpu.dot_dimension_numbers<[1], [0], [0], [1], [0, 0, 1, 1], [], []>, precision = #tpu.contract_precision<fp32>} : vector<32x16xf32>, vector<16x8xf32>, vector<32x8xf32> -> vector<32x8xf32>
    %38 = vector.shape_cast %37 : vector<32x8xf32> to vector<4x8x8xf32>
    %c0_20 = arith.constant 0 : index
    %c12 = arith.constant 12 : index
    %c0_21 = arith.constant 0 : index
    %c0_22 = arith.constant 0 : index
    %39 = vector.load %arg3[%c0_20, %c12, %c0_21, %c0_22] : memref<1x16x8x8xf32, #tpu.memory_space<vmem>>, vector<1x4x8x8xf32>
    %40 = vector.shape_cast %39 : vector<1x4x8x8xf32> to vector<4x8x8xf32>
    %41 = vector.shape_cast %38 : vector<4x8x8xf32> to vector<1x4x8x8xf32>
    tpu.vector_store %arg3[%c0_20, %c12, %c0_21, %c0_22], %41 {strides = array<i32>} : memref<1x16x8x8xf32, #tpu.memory_space<vmem>>, vector<1x4x8x8xf32>,
    return
  }
  func.func @transform_0(%arg0: i32, %arg1: i32) -> (i32, i32, i32, i32) {
    %c0_i32 = arith.constant 0 : i32
    %c0_i32_0 = arith.constant 0 : i32
    %c0_i32_1 = arith.constant 0 : i32
    return %arg0, %c0_i32, %arg1, %c0_i32_0 : i32, i32, i32, i32
  }
  func.func @transform_1(%arg0: i32, %arg1: i32) -> (i32, i32, i32, i32) {
    %c0_i32 = arith.constant 0 : i32
    %c0_i32_0 = arith.constant 0 : i32
    %c0_i32_1 = arith.constant 0 : i32
    return %arg0, %c0_i32, %arg1, %c0_i32_0 : i32, i32, i32, i32
  }
}

</mosaic_0001>

<bundles_post_ra>
// kernel: tpu_custom_call.1
= control target key start
LH: loop header
LB: loop body
LE: loop exit
PB: predicated region body
PF: predicated region fallthrough
CT: control target
= control target key end

     0   :  { %6 = vsyncpa [#allocation3], 0  ;;  %s3861_s0 = inlined_call_operand.hbm [shape: f32[2,4,16,16], index: 0, kind: input, shape index: {}]   ;;  %s3862_s1 = inlined_call_operand.vmem [shape: f32[2,16,8,8], index: 1, kind: output, shape index: {}]  }
   0x1   :  { %8 = vsyncpa [#allocation3 + $0x1], 0  ;;  %s3285_s6 = smov 0   ;;  %s3287_s7 = smov 0  }
   0x2   :  { %s3289_s8 = smov 0   ;;  %s3291_s9 = smov 0  }
   0x3   :  { %s3293_s10 = smov 0   ;;  %s3295_s11 = smov 0  }
   0x4 LB: > { %s2685_s12 = sadd.s32 4294967295, %s3268_s11   ;;  %s26_s13 = sadd.s32 1, %s3264_s10  ;;  %s3268_s11 = sphi %s3295_s11, %s14_s11   ;;  %s3264_s10 = sphi %s3293_s10, %s3878_s10   ;;  %s3260_s9 = sphi %s3291_s9, %s3877_s9   ;;  %s3256_s8 = sphi %s3289_s8, %s3876_s8   ;;  %s3252_s7 = sphi %s3287_s7, %s3875_s7   ;;  %s3248_s6 = sphi %s3285_s6, %s3874_s6  }
   0x5   : > { %p28_p0 = scmp.ge.s32.totalorder %s26_s13, 2  ;;  %s35_s14 = sadd.s32 1, %s3256_s8 }
   0x6   : > { %p42_p1 = scmp.ne.s32.totalorder %s3256_s8, %s3252_s7  ;;  %p43_p2 = scmp.eq.s32.totalorder %s3268_s11, 0 }
   0x7   : > { %s3880_s13 = smov (%p28_p0, %s26_s13), 0  ;;  %p48_p4 = scmp.ne.s32.totalorder %s3252_s7, %s3248_s6 }
   0x8   : > { %p3321_p3 = por %p43_p2, %p42_p1  ;;  %s30_s16 = ssub.s32 %s3264_s10, %s3880_s13 }
   0x9   : > { %p49_p5 = scmp.eq.s32.totalorder %s2685_s12, 0  ;;  %p33_p6 = scmp.eq.s32.totalorder %s30_s16, 0 }
   0xa   : > { %p3137_p8 = scmp.lt.s32.totalorder %s3268_s11, 2  ;;  %s100_s19 = sand.u32 1, %s3256_s8  }
   0xb   : > { %p3328_p7 = por %p49_p5, %p48_p4  ;;  %s2745_s20 = sshll.u32 %s3264_s10, 10 }
   0xc   : > { %s3334_s18 = scalar_select %p33_p6, %s3256_s8, %s35_s14  }
   0xd   : > { %s2689_s21 = sshll.u32 %s100_s19, 6  ;;  %s112_s24 = scalar_lea.hbm %s3861_s0, %s2745_s20 }
   0xe   : > { %s104_s25 = scalar_lea.vmem [#allocation2], %s2689_s21  ;;  %p3343_p9 = pnand %p3137_p8, %p3321_p3 }
   0xf   : > { %s113_s26 = sshll.u32 %s104_s25, 4  ;;  %s101_s28 = scalar_lea.sflag [#allocation3], %s100_s19  ;;  %s114_s26 = int_to_ptr.vmem [resolvable:$true] %s113_s26 }
  0x10   : > { %p3192_p10 = pneg %p3343_p9  ;;  %s3203_s29 = scalar_lea.vmem %s114_s26, 1024 }
  0x11   : > { %p3204_p11 = scmp.ne.s32.totalorder %s114_s26, %s3203_s29  ;;  %s3270_s30 = smov [#allocation2]  }
  0x12   : > { %s3208_s2 = sshll.u32 %s3270_s30, 4  ;;  %s3209_s2 = int_to_ptr.vmem [resolvable:$false] %s3208_s2 }
  0x13   : > { %p3206_p12 = pnand %p3204_p11, %p3192_p10  ;;  %s3210_s3 = scalar_lea.vmem %s3209_s2, 2048 }
  0x14   : > { %p3211_p0 = scmp.lt.s32.totalorder %s114_s26, %s3209_s2  ;;  %p3212_p1 = scmp.lt.s32.totalorder %s3210_s3, %s3203_s29 }
  0x15   : > { %p3207_p13 = pneg %p3206_p12 }
  0x16   : > { %p3213_p2 = por %p3212_p1, %p3211_p0 }
  0x18   : > { %p3214_p3 = pnand %p3213_p2, %p3207_p13 }
  0x1a   : > { %3217 = shalt.err (!%p3214_p3)
}
  0x1b   : > { %s3271_s4 = smov 128   ;;  %s3272_s5 = smov 8  }
  0x1c   : > { %3136 = dma.hbm_to_vmem [thread:$0]  (!%p3343_p9), %s112_s24, 1024, %s114_s26, %s101_s28, %s3271_s4, %s3271_s4, %s3272_s5  }
  0x1d   : > { %p2692_p4 = scmp.ge.s32.totalorder %s3268_s11, 1  ;;  %p121_p5 = scmp.lt.s32.totalorder %s3268_s11, 3 }
  0x1f   : > { %p122_p6 = pnand %p2692_p4, %p121_p5 }
  0x20   : > { %s127_s6 = sand.u32 (!%p122_p6), 1, %s3252_s7  }
  0x21   : > { %125 = sbr.rel (%p122_p6) target bundleno = 349 (0x15d), region = 24  ;;  %s2693_s12 = sshll.u32 (!%p122_p6), %s127_s6, 6 }
  0x22   : > { %s128_s14 = scalar_lea.sflag (!%p122_p6), [#allocation3], %s127_s6  ;;  %s3354_s15 = scalar_lea.vmem (!%p122_p6), [#allocation2], %s2693_s12 }
  0x26   : > { %3243 = dma.done.wait (%p3328_p7), %s128_s14, 1024  }
  0x27   : > { %3245 = vsyncadd (%p3328_p7), %s128_s14, 4294966272  ;;  %v162_v0 = vlaneseq  ;;  %vm188_vm0 = vcmask 130048   ;;  %v3273_v7 = vmov 1.0   ;;  %v3274_v8 = vmov 0.0   ;;  %v181_v11 = vld [vmem:[%s3354_s15] ss:$2 sm:$0xff] }
  0x28   : > { %v2700_v12 = vld [vmem:[%s3354_s15 + $0x10] ss:$2 sm:$0xff]  ;;  %v190_v15 = vsel %vm188_vm0, %v181_v11, 0  ;;  %v2701_v17 = vld [vmem:[%s3354_s15 + $0x20] ss:$2 sm:$0xff]  ;;  %p154_p7 = scmp.lt.s32.totalorder %s3260_s9, 1 }
  0x29   : > { %v163_v1 = vshrl.u32 %v162_v0, 7  ;;  %v166_v2 = vand.u32 127, %v162_v0  ;;  %v193_v16 = vsel %vm188_vm0, %v2700_v12, 0  ;;  %v2702_v18 = vld [vmem:[%s3354_s15 + $0x30] ss:$2 sm:$0xff]  ;;  %v3391_v19 = vand.u32 4294901760, %v190_v15 }
  0x2a   : > { %v3393_v20 = vand.u32 4294901760, %v193_v16  ;;  %v196_v21 = vsel %vm188_vm0, %v2701_v17, 0  ;;  %v199_v22 = vsel %vm188_vm0, %v2702_v18, 0  ;;  %v2719_v60 = vld [vmem:[%s3354_s15 + $0x1] ss:$2 sm:$0xff]  ;;  %s3882_s9 = smov (!%p154_p7, %s3260_s9), 1 }
  0x2b   : > { %v164_v3 = vadd.s32 8, %v163_v1  ;;  %v167_v4 = vmul.u32 2, %v166_v2  ;;  %v3406_v25 = vand.u32 4294901760, %v196_v21  ;;  %v3408_v26 = vand.u32 4294901760, %v199_v22  ;;  %2905 = vmatprep.mubr.f32.mxu1 %v3391_v19  ;;  %v2720_v61 = vld [vmem:[%s3354_s15 + $0x11] ss:$2 sm:$0xff] }
  0x2c   : > { %v3411_v27 = vsub.f32 %v190_v15, %v3391_v19  ;;  %v3416_v28 = vsub.f32 %v193_v16, %v3393_v20  ;;  %v1396_v62 = vsel %vm188_vm0, %v2719_v60, 0  ;;  %v2721_v63 = vld [vmem:[%s3354_s15 + $0x21] ss:$2 sm:$0xff]  ;;  %v1399_v0 = vsel %vm188_vm0, %v2720_v61, 0  ;;  %v2722_v2 = vld [vmem:[%s3354_s15 + $0x31] ss:$2 sm:$0xff] }
  0x2d   : > { %vm3360_vm1 = vcmp.eq.s32.totalorder %v164_v3, %v167_v4  ;;  %vm3364_vm2 = vcmp.eq.s32.totalorder %v163_v1, %v167_v4  ;;  %v174_v29 = vadd.s32 1, %v167_v4  ;;  %v3423_v32 = vsub.f32 %v196_v21, %v3406_v25  ;;  %s2746_s16 = sshll.u32 %s3882_s9, 7 }
  0x2e   : > { %2891 = vmatprep.subr.msk.mxu0 %vm3360_vm1, %v3273_v7  ;;  %v2697_v9 = vsel %vm3360_vm1, 1.0, %v3274_v8  ;;  %v2696_v10 = vsel %vm3364_vm2, 1.0, %v3274_v8  ;;  %v3426_v33 = vsub.f32 %v199_v22, %v3408_v26  ;;  %v3429_v34 = vand.u32 4294901760, %v3411_v27  ;;  %s3809_s20 = scalar_lea.vmem %s3862_s1, %s2746_s16 }
  0x2f   : > { %2892 = vmatpush3.msk.msra.mxu0 %vm3360_vm1, %v3273_v7  ;;  %v3380_v13 = vsub.f32 %v2697_v9, %v2697_v9  ;;  %v3382_v14 = vsub.f32 %v2696_v10, %v2696_v10  ;;  %v3432_v35 = vand.u32 4294901760, %v3416_v28  ;;  %v3439_v38 = vand.u32 4294901760, %v3423_v32 }
  0x30   : > { %2893 = vmatprep.subr.msk.mxu0 %vm3364_vm2, %v3273_v7  ;;  %v3442_v39 = vand.u32 4294901760, %v3426_v33  ;;  %v271_v40 = vsub.f32 %v3411_v27, %v3429_v34  ;;  %vm3448_vm3 = vcmp.eq.s32.totalorder %v164_v3, %v174_v29  ;;  %vm3469_vm4 = vcmp.eq.s32.totalorder %v163_v1, %v174_v29 }
  0x31   : > { %v3398_v23 = vand.u32 4294901760, %v3380_v13  ;;  %2894 = vmatpush3.msk.msra.mxu0 %vm3364_vm2, %v3273_v7  ;;  %v3404_v24 = vand.u32 4294901760, %v3382_v14  ;;  %v281_v41 = vsub.f32 %v3416_v28, %v3432_v35  ;;  %v291_v43 = vsub.f32 %v3423_v32, %v3439_v38 }
  0x32   : > { %2911 = vmatprep.subr.mxu0 %v3380_v13  ;;  %v301_v44 = vsub.f32 %v3426_v33, %v3442_v39  ;;  %v3458_v45 = vand.u32 4294901760, %v271_v40  ;;  %v2699_v48 = vsel %vm3448_vm3, 1.0, %v3274_v8  ;;  %v2698_v52 = vsel %vm3469_vm4, 1.0, %v3274_v8 }
  0x33   : > { %v340_v30 = vsub.f32 %v3380_v13, %v3398_v23  ;;  %v347_v31 = vsub.f32 %v3382_v14, %v3404_v24  ;;  %v3460_v46 = vand.u32 4294901760, %v281_v41  ;;  %v3463_v47 = vand.u32 4294901760, %v291_v43 }
  0x34   : > { %2895 = vmatprep.mubr.f32.mxu0 %v3458_v45  ;;  %v3475_v50 = vand.u32 4294901760, %v301_v44  ;;  %v3481_v51 = vsub.f32 %v2699_v48, %v2699_v48  ;;  %v3500_v54 = vsub.f32 %v2698_v52, %v2698_v52  ;;  %v3582_v1 = vand.u32 4294901760, %v1396_v62 }
  0x35   : > { %v3434_v36 = vand.u32 4294901760, %v340_v30  ;;  %v3436_v37 = vand.u32 4294901760, %v347_v31  ;;  %2896 = vmatmul.mubr.f32.vlgmr.msra.gmra.mxu0 %v3460_v46  ;;  %v1402_v3 = vsel %vm188_vm0, %v2721_v63, 0  ;;  %v3590_v4 = vand.u32 4294901760, %v1399_v0 }
  0x36   : > { %2912 = vmatpush3.msra.mxu0 %v3380_v13  ;;  %2898 = vmatprep.mubr.f32.mxu0 %v3463_v47  ;;  %v3498_v53 = vand.u32 4294901760, %v3481_v51  ;;  %v3517_v56 = vand.u32 4294901760, %v3500_v54  ;;  %v1405_v8 = vsel %vm188_vm0, %v2722_v2, 0  ;;  %v3602_v9 = vsub.f32 %v1396_v62, %v3582_v1 }
  0x37   : > { %2901 = vmatprep.subr.mxu1 %v3434_v36  ;;  %2913 = vmatprep.subr.mxu0 %v3382_v14  ;;  %v3604_v10 = vand.u32 4294901760, %v1402_v3  ;;  %v3611_v11 = vsub.f32 %v1399_v0, %v3590_v4  ;;  %v3613_v12 = vand.u32 4294901760, %v1405_v8  ;;  %vm789_vm5 = vcmask 64512  }
  0x38   : > { %2902 = vmatpush3.msra.mxu1 %v3434_v36  ;;  %2914 = vmatpush3.msra.mxu0 %v3382_v14  ;;  %v933_v55 = vsub.f32 %v3481_v51, %v3498_v53  ;;  %v940_v58 = vsub.f32 %v3500_v54, %v3517_v56  ;;  %v3624_v15 = vand.u32 4294901760, %v3602_v9 }
  0x39   : > { %2903 = vmatprep.subr.mxu1 %v3436_v37  ;;  %2899 = vmatmul.mubr.f32.gmra.mxu0 %v3475_v50  ;;  %v3627_v16 = vsub.f32 %v1402_v3, %v3604_v10  ;;  %v3634_v17 = vand.u32 4294901760, %v3611_v11  ;;  %v3637_v18 = vsub.f32 %v1405_v8, %v3613_v12 }
  0x3a   : > { %2904 = vmatpush3.msra.mxu1 %v3436_v37  ;;  %2915 = vmatprep.mubr.f32.mxu0 %v3411_v27  ;;  %v3531_v57 = vand.u32 4294901760, %v933_v55  ;;  %v3549_v59 = vand.u32 4294901760, %v940_v58  ;;  %v1477_v21 = vsub.f32 %v3602_v9, %v3624_v15 }
  0x3b   : > { %2906 = vmatmul.mubr.f32.vlgmr.msra.gmra.mxu1 %v3393_v20  ;;  %2921 = vmatprep.subr.msk.mxu1 %vm3360_vm1, %v3273_v7  ;;  %v3650_v22 = vand.u32 4294901760, %v3627_v16 }
  0x3c   : > { %2922 = vmatpush3.msk.msra.mxu1 %vm3360_vm1, %v3273_v7  ;;  %2908 = vmatprep.mubr.f32.mxu1 %v3406_v25 }
  0x3d   : > { %2923 = vmatprep.subr.msk.mxu1 %vm3364_vm2, %v3273_v7  ;;  %2931 = vmatprep.subr.mxu0 %v3398_v23 }
  0x3e   : > { %2924 = vmatpush3.msk.msra.mxu1 %vm3364_vm2, %v3273_v7  ;;  %2916 = vmatmul.mubr.f32.vlgmr.msra.gmra.mxu0 %v3416_v28 }
  0x3f   : > { %2909 = vmatmul.mubr.f32.gmra.mxu1 %v3408_v26  ;;  %2932 = vmatpush3.msra.mxu0 %v3398_v23 }
  0x40   : > { %2925 = vmatprep.mubr.f32.mxu1 %v3429_v34  ;;  %2941 = vmatprep.subr.msk.mxu1 %vm3360_vm1, %v3273_v7 }
  0x41   : > { %2918 = vmatprep.mubr.f32.mxu0 %v3423_v32  ;;  %2933 = vmatprep.subr.mxu0 %v3404_v24 }
  0x42   : > { %2919 = vmatmul.mubr.f32.gmra.mxu0 %v3426_v33 }
  0x43   : > { %2926 = vmatmul.mubr.f32.vlgmr.msra.gmra.mxu1 %v3432_v35  ;;  %2934 = vmatpush3.msra.mxu0 %v3404_v24 }
  0x44   : > { %2942 = vmatpush3.msk.msra.mxu1 %vm3360_vm1, %v3273_v7  ;;  %2928 = vmatprep.mubr.f32.mxu1 %v3439_v38 }
  0x45   : > { %2943 = vmatprep.subr.msk.mxu1 %vm3364_vm2, %v3273_v7  ;;  %2935 = vmatprep.mubr.f32.mxu0 %v3391_v19 }
  0x46   : > { %2944 = vmatpush3.msk.msra.mxu1 %vm3364_vm2, %v3273_v7  ;;  %2951 = vmatprep.subr.msk.mxu0 %vm3448_vm3, %v3273_v7 }
  0x47   : > { %2929 = vmatmul.mubr.f32.gmra.mxu1 %v3442_v39  ;;  %2936 = vmatmul.mubr.f32.vlgmr.msra.gmra.mxu0 %v3393_v20 }
  0x48   : > { %2945 = vmatprep.mubr.f32.mxu1 %v3391_v19  ;;  %2952 = vmatpush3.msk.msra.mxu0 %vm3448_vm3, %v3273_v7 }
  0x49   : > { %2961 = vmatprep.subr.mxu1 %v3531_v57  ;;  %2938 = vmatprep.mubr.f32.mxu0 %v3406_v25 }
  0x4a   : > { %2953 = vmatprep.subr.msk.mxu0 %vm3469_vm4, %v3273_v7 }
  0x4b   : > { %2946 = vmatmul.mubr.f32.vlgmr.msra.gmra.mxu1 %v3393_v20  ;;  %2939 = vmatmul.mubr.f32.gmra.mxu0 %v3408_v26 }
  0x4c   : > { %2962 = vmatpush3.msra.mxu1 %v3531_v57  ;;  %2948 = vmatprep.mubr.f32.mxu1 %v3406_v25 }
  0x4d   : > { %2954 = vmatpush3.msk.msra.mxu0 %vm3469_vm4, %v3273_v7  ;;  %2963 = vmatprep.subr.mxu1 %v3549_v59 }
  0x4e   : > { %2964 = vmatpush3.msra.mxu1 %v3549_v59  ;;  %2955 = vmatprep.mubr.f32.mxu0 %v3458_v45 }
  0x4f   : > { %2949 = vmatmul.mubr.f32.gmra.mxu1 %v3408_v26  ;;  %2971 = vmatprep.subr.mxu0 %v3481_v51 }
  0x50   : > { %2965 = vmatprep.mubr.f32.mxu1 %v3391_v19  ;;  %2956 = vmatmul.mubr.f32.vlgmr.msra.gmra.mxu0 %v3460_v46 }
  0x51   : > { %2972 = vmatpush3.msra.mxu0 %v3481_v51  ;;  %2981 = vmatprep.subr.msk.mxu1 %vm3448_vm3, %v3273_v7 }
  0x52   : > { %2958 = vmatprep.mubr.f32.mxu0 %v3463_v47  ;;  %2973 = vmatprep.subr.mxu0 %v3500_v54 }
  0x53   : > { %2966 = vmatmul.mubr.f32.vlgmr.msra.gmra.mxu1 %v3393_v20  ;;  %2974 = vmatpush3.msra.mxu0 %v3500_v54 }
  0x54   : > { %2982 = vmatpush3.msk.msra.mxu1 %vm3448_vm3, %v3273_v7  ;;  %2968 = vmatprep.mubr.f32.mxu1 %v3406_v25 }
  0x55   : > { %2959 = vmatmul.mubr.f32.gmra.mxu0 %v3475_v50  ;;  %2983 = vmatprep.subr.msk.mxu1 %vm3469_vm4, %v3273_v7 }
  0x56   : > { %2984 = vmatpush3.msk.msra.mxu1 %vm3469_vm4, %v3273_v7  ;;  %2975 = vmatprep.mubr.f32.mxu0 %v3411_v27  ;;  %v1487_v27 = vsub.f32 %v3611_v11, %v3634_v17 }
  0x57   : > { %2969 = vmatmul.mubr.f32.gmra.mxu1 %v3408_v26  ;;  %2991 = vmatprep.subr.mxu0 %v3498_v53 }
  0x58   : > { %2985 = vmatprep.mubr.f32.mxu1 %v3429_v34  ;;  %3001 = vmatprep.subr.msk.mxu1 %vm3448_vm3, %v3273_v7  ;;  %v1488_v29 = vand.u32 4294901760, %v1487_v27 }
  0x59   : > { %2976 = vmatmul.mubr.f32.vlgmr.msra.gmra.mxu0 %v3416_v28  ;;  %v3661_v28 = vand.u32 4294901760, %v3637_v18 }
  0x5a   : > { %2992 = vmatpush3.msra.mxu0 %v3498_v53  ;;  %2978 = vmatprep.mubr.f32.mxu0 %v3423_v32 }
  0x5b   : > { %2986 = vmatmul.mubr.f32.vlgmr.msra.gmra.mxu1 %v3432_v35  ;;  %2993 = vmatprep.subr.mxu0 %v3517_v56  ;;  %v1507_v30 = vsub.f32 %v3637_v18, %v3661_v28 }
  0x5c   : > { %3002 = vmatpush3.msk.msra.mxu1 %vm3448_vm3, %v3273_v7  ;;  %2988 = vmatprep.mubr.f32.mxu1 %v3439_v38 }
  0x5d   : > { %2979 = vmatmul.mubr.f32.gmra.mxu0 %v3426_v33  ;;  %3003 = vmatprep.subr.msk.mxu1 %vm3469_vm4, %v3273_v7 }
  0x5e   : > { %2994 = vmatpush3.msra.mxu0 %v3517_v56  ;;  %3004 = vmatpush3.msk.msra.mxu1 %vm3469_vm4, %v3273_v7 }
  0x5f   : > { %2989 = vmatmul.mubr.f32.gmra.mxu1 %v3442_v39  ;;  %2995 = vmatprep.mubr.f32.mxu0 %v3391_v19 }
  0x60   : > { %3005 = vmatprep.mubr.f32.mxu1 %v3391_v19  ;;  %3011 = vmatprep.subr.msk.mxu0 %vm3360_vm1, %v3273_v7  ;;  %v1478_v19 = vand.u32 4294901760, %v1477_v21 }
  0x61   : > { %2996 = vmatmul.mubr.f32.vlgmr.msra.gmra.mxu0 %v3393_v20  ;;  %3021 = vmatprep.subr.mxu1 %v3434_v36 }
  0x62   : > { %3012 = vmatpush3.msk.msra.mxu0 %vm3360_vm1, %v3273_v7  ;;  %2998 = vmatprep.mubr.f32.mxu0 %v3406_v25 }
  0x63   : > { %3006 = vmatmul.mubr.f32.vlgmr.msra.gmra.mxu1 %v3393_v20  ;;  %v1497_v20 = vsub.f32 %v3627_v16, %v3650_v22  ;;  %3013 = vmatprep.subr.msk.mxu0 %vm3364_vm2, %v3273_v7 }
  0x64   : > { %3022 = vmatpush3.msra.mxu1 %v3434_v36  ;;  %3008 = vmatprep.mubr.f32.mxu1 %v3406_v25 }
  0x65   : > { %2999 = vmatmul.mubr.f32.gmra.mxu0 %v3408_v26  ;;  %3023 = vmatprep.subr.mxu1 %v3436_v37  ;;  %v1498_v25 = vand.u32 4294901760, %v1497_v20 }
  0x66   : > { %3014 = vmatpush3.msk.msra.mxu0 %vm3364_vm2, %v3273_v7  ;;  %3024 = vmatpush3.msra.mxu1 %v3436_v37 }
  0x67   : > { %3009 = vmatmul.mubr.f32.gmra.mxu1 %v3408_v26  ;;  %3015 = vmatprep.mubr.f32.mxu0 %v1478_v19  ;;  %v1508_v26 = vand.u32 4294901760, %v1507_v30 }
  0x68   : > { %3025 = vmatprep.mubr.f32.mxu1 %v3582_v1  ;;  %3031 = vmatprep.subr.mxu0 %v3380_v13 }
  0x69   : > { %3016 = vmatmul.mubr.f32.vlgmr.msra.gmra.mxu0 %v1488_v29  ;;  %3041 = vmatprep.subr.msk.mxu1 %vm3360_vm1, %v3273_v7 }
  0x6a   : > { %3032 = vmatpush3.msra.mxu0 %v3380_v13  ;;  %3018 = vmatprep.mubr.f32.mxu0 %v1498_v25 }
  0x6b   : > { %3026 = vmatmul.mubr.f32.vlgmr.msra.gmra.mxu1 %v3590_v4  ;;  %3033 = vmatprep.subr.mxu0 %v3382_v14 }
  0x6c   : > { %3042 = vmatpush3.msk.msra.mxu1 %vm3360_vm1, %v3273_v7  ;;  %3028 = vmatprep.mubr.f32.mxu1 %v3604_v10 }
  0x6d   : > { %3019 = vmatmul.mubr.f32.gmra.mxu0 %v1508_v26  ;;  %3043 = vmatprep.subr.msk.mxu1 %vm3364_vm2, %v3273_v7 }
  0x6e   : > { %3034 = vmatpush3.msra.mxu0 %v3382_v14  ;;  %3044 = vmatpush3.msk.msra.mxu1 %vm3364_vm2, %v3273_v7 }
  0x6f   : > { %3029 = vmatmul.mubr.f32.gmra.mxu1 %v3613_v12  ;;  %3035 = vmatprep.mubr.f32.mxu0 %v3602_v9 }
  0x70   : > { %3045 = vmatprep.mubr.f32.mxu1 %v3624_v15  ;;  %3051 = vmatprep.subr.mxu0 %v3398_v23 }
  0x71   : > { %3036 = vmatmul.mubr.f32.vlgmr.msra.gmra.mxu0 %v3611_v11  ;;  %3061 = vmatprep.subr.msk.mxu1 %vm3360_vm1, %v3273_v7 }
  0x72   : > { %3052 = vmatpush3.msra.mxu0 %v3398_v23  ;;  %3038 = vmatprep.mubr.f32.mxu0 %v3627_v16 }
  0x73   : > { %3046 = vmatmul.mubr.f32.vlgmr.msra.gmra.mxu1 %v3634_v17  ;;  %3053 = vmatprep.subr.mxu0 %v3404_v24 }
  0x74   : > { %3062 = vmatpush3.msk.msra.mxu1 %vm3360_vm1, %v3273_v7  ;;  %3048 = vmatprep.mubr.f32.mxu1 %v3650_v22 }
  0x75   : > { %3039 = vmatmul.mubr.f32.gmra.mxu0 %v3637_v18  ;;  %3063 = vmatprep.subr.msk.mxu1 %vm3364_vm2, %v3273_v7 }
  0x76   : > { %3054 = vmatpush3.msra.mxu0 %v3404_v24  ;;  %3064 = vmatpush3.msk.msra.mxu1 %vm3364_vm2, %v3273_v7 }
  0x77   : > { %3049 = vmatmul.mubr.f32.gmra.mxu1 %v3661_v28  ;;  %3055 = vmatprep.mubr.f32.mxu0 %v3582_v1 }
  0x78   : > { %3065 = vmatprep.mubr.f32.mxu1 %v3582_v1  ;;  %3071 = vmatprep.subr.msk.mxu0 %vm3448_vm3, %v3273_v7 }
  0x79   : > { %3056 = vmatmul.mubr.f32.vlgmr.msra.gmra.mxu0 %v3590_v4  ;;  %3081 = vmatprep.subr.mxu1 %v3531_v57 }
  0x7a   : > { %3072 = vmatpush3.msk.msra.mxu0 %vm3448_vm3, %v3273_v7  ;;  %3058 = vmatprep.mubr.f32.mxu0 %v3604_v10 }
  0x7b   : > { %3066 = vmatmul.mubr.f32.vlgmr.msra.gmra.mxu1 %v3590_v4  ;;  %3073 = vmatprep.subr.msk.mxu0 %vm3469_vm4, %v3273_v7 }
  0x7c   : > { %3082 = vmatpush3.msra.mxu1 %v3531_v57  ;;  %3068 = vmatprep.mubr.f32.mxu1 %v3604_v10 }
  0x7d   : > { %3059 = vmatmul.mubr.f32.gmra.mxu0 %v3613_v12  ;;  %3083 = vmatprep.subr.mxu1 %v3549_v59 }
  0x7e   : > { %3074 = vmatpush3.msk.msra.mxu0 %vm3469_vm4, %v3273_v7  ;;  %3084 = vmatpush3.msra.mxu1 %v3549_v59 }
  0x7f   : > { %3069 = vmatmul.mubr.f32.gmra.mxu1 %v3613_v12  ;;  %3075 = vmatprep.mubr.f32.mxu0 %v1478_v19 }
  0x80   : > { %3085 = vmatprep.mubr.f32.mxu1 %v3582_v1  ;;  %3091 = vmatprep.subr.mxu0 %v3481_v51 }
  0x81   : > { %3076 = vmatmul.mubr.f32.vlgmr.msra.gmra.mxu0 %v1488_v29  ;;  %3101 = vmatprep.subr.msk.mxu1 %vm3448_vm3, %v3273_v7 }
  0x82   : > { %3092 = vmatpush3.msra.mxu0 %v3481_v51  ;;  %3078 = vmatprep.mubr.f32.mxu0 %v1498_v25 }
  0x83   : > { %3086 = vmatmul.mubr.f32.vlgmr.msra.gmra.mxu1 %v3590_v4  ;;  %3093 = vmatprep.subr.mxu0 %v3500_v54 }
  0x84   : > { %3102 = vmatpush3.msk.msra.mxu1 %vm3448_vm3, %v3273_v7  ;;  %3088 = vmatprep.mubr.f32.mxu1 %v3604_v10 }
  0x85   : > { %3079 = vmatmul.mubr.f32.gmra.mxu0 %v1508_v26  ;;  %3103 = vmatprep.subr.msk.mxu1 %vm3469_vm4, %v3273_v7 }
  0x86   : > { %3094 = vmatpush3.msra.mxu0 %v3500_v54  ;;  %3104 = vmatpush3.msk.msra.mxu1 %vm3469_vm4, %v3273_v7 }
  0x87   : > { %3089 = vmatmul.mubr.f32.gmra.mxu1 %v3613_v12  ;;  %3095 = vmatprep.mubr.f32.mxu0 %v3602_v9 }
  0x88   : > { %3105 = vmatprep.mubr.f32.mxu1 %v3624_v15  ;;  %3111 = vmatprep.subr.mxu0 %v3498_v53 }
  0x89   : > { %3096 = vmatmul.mubr.f32.vlgmr.msra.gmra.mxu0 %v3611_v11  ;;  %3121 = vmatprep.subr.msk.mxu1 %vm3448_vm3, %v3273_v7 }
  0x8a   : > { %3112 = vmatpush3.msra.mxu0 %v3498_v53  ;;  %3098 = vmatprep.mubr.f32.mxu0 %v3627_v16 }
  0x8b   : > { %3106 = vmatmul.mubr.f32.vlgmr.msra.gmra.mxu1 %v3634_v17  ;;  %3113 = vmatprep.subr.mxu0 %v3517_v56 }
  0x8c   : > { %3122 = vmatpush3.msk.msra.mxu1 %vm3448_vm3, %v3273_v7  ;;  %3108 = vmatprep.mubr.f32.mxu1 %v3650_v22 }
  0x8d   : > { %3099 = vmatmul.mubr.f32.gmra.mxu0 %v3637_v18  ;;  %3123 = vmatprep.subr.msk.mxu1 %vm3469_vm4, %v3273_v7 }
  0x8e   : > { %3114 = vmatpush3.msra.mxu0 %v3517_v56  ;;  %3124 = vmatpush3.msk.msra.mxu1 %vm3469_vm4, %v3273_v7 }
  0x8f   : > { %3109 = vmatmul.mubr.f32.gmra.mxu1 %v3661_v28  ;;  %3115 = vmatprep.mubr.f32.mxu0 %v3582_v1 }
  0x90   : > { %3125 = vmatprep.mubr.f32.mxu1 %v3582_v1 }
  0x91   : > { %3116 = vmatmul.mubr.f32.vlgmr.msra.gmra.mxu0 %v3590_v4 }
  0x92   : > { %3118 = vmatprep.mubr.f32.mxu0 %v3604_v10 }
  0x93   : > { %3126 = vmatmul.mubr.f32.vlgmr.msra.gmra.mxu1 %v3590_v4 }
  0x94   : > { %3128 = vmatprep.mubr.f32.mxu1 %v3604_v10 }
  0x95   : > { %3119 = vmatmul.mubr.f32.gmra.mxu0 %v3613_v12 }
  0x97   : > { %3129 = vmatmul.mubr.f32.gmra.mxu1 %v3613_v12 }
  0xf5   : > { %v2897_v5 = vpop.f32.mrf.mxu0 }
  0xf7   : > { %v274_v7 = vpop.f32.mrf.mxu0 }
  0xf9   : > { %v2900_v14 = vpop.f32.mrf.mxu0 }
  0xfb   : > { %v2907_v6 = vpop.f32.mrf.mxu1  ;;  %v294_v24 = vpop.f32.mrf.mxu0 }
  0xfc   : > { %v392_v34 = vadd.f32 %v2907_v6, %v2897_v5 }
  0xfd   : > { %v385_v13 = vpop.f32.mrf.mxu1 }
  0xfe   : > { %v2917_v32 = vpop.f32.mrf.mxu0  ;;  %v386_v37 = vadd.f32 %v385_v13, %v274_v7 }
  0xff   : > { %v2910_v23 = vpop.f32.mrf.mxu1  ;;  %v487_v38 = vadd.f32 %v2917_v32, %v392_v34 }
 0x100   : > { %v479_v35 = vpop.f32.mrf.mxu0  ;;  %v404_v41 = vadd.f32 %v2910_v23, %v2900_v14 }
 0x101   : > { %v397_v31 = vpop.f32.mrf.mxu1  ;;  %v480_v42 = vadd.f32 %v479_v35, %v386_v37 }
 0x102   : > { %v2920_v39 = vpop.f32.mrf.mxu0  ;;  %v398_v45 = vadd.f32 %v397_v31, %v294_v24 }
 0x103   : > { %v2927_v33 = vpop.f32.mrf.mxu1  ;;  %v501_v47 = vadd.f32 %v2920_v39, %v404_v41 }
 0x104   : > { %v493_v43 = vpop.f32.mrf.mxu0  ;;  %v584_v46 = vadd.f32 %v2927_v33, %v487_v38 }
 0x105   : > { %v575_v36 = vpop.f32.mrf.mxu1  ;;  %v494_v51 = vadd.f32 %v493_v43, %v398_v45 }
 0x106   : > { %v576_v50 = vadd.f32 %v575_v36, %v480_v42 }
 0x107   : > { %v2930_v40 = vpop.f32.mrf.mxu1  ;;  %v2937_v48 = vpop.f32.mrf.mxu0 }
 0x108   : > { %v683_v52 = vadd.f32 %v2937_v48, %v584_v46  ;;  %v600_v55 = vadd.f32 %v2930_v40, %v501_v47 }
 0x109   : > { %v591_v44 = vpop.f32.mrf.mxu1  ;;  %v676_v53 = vpop.f32.mrf.mxu0 }
 0x10a   : > { %v677_v57 = vadd.f32 %v676_v53, %v576_v50  ;;  %v592_v60 = vadd.f32 %v591_v44, %v494_v51 }
 0x10b   : > { %v2947_v49 = vpop.f32.mrf.mxu1  ;;  %v2940_v58 = vpop.f32.mrf.mxu0 }
 0x10c   : > { %v774_v56 = vadd.f32 %v2947_v49, %v683_v52  ;;  %v695_v62 = vadd.f32 %v2940_v58, %v600_v55 }
 0x10d   : > { %v767_v54 = vpop.f32.mrf.mxu1  ;;  %v688_v63 = vpop.f32.mrf.mxu0 }
 0x10e   : > { %791 = vst.msk [vmem:[%s3809_s20 + $0x8] sm:$0xff] %vm789_vm5, %v774_v56  ;;  %v768_v61 = vadd.f32 %v767_v54, %v677_v57  ;;  %v689_v2 = vadd.f32 %v688_v63, %v592_v60 }
 0x10f   : > { %v2950_v59 = vpop.f32.mrf.mxu1 }
 0x110   : > { %790 = vst.msk [vmem:[%s3809_s20] sm:$0xff] %vm789_vm5, %v768_v61  ;;  %v786_v1 = vadd.f32 %v2950_v59, %v695_v62  ;;  %v2957_v3 = vpop.f32.mrf.mxu0 }
 0x111   : > { %v779_v0 = vpop.f32.mrf.mxu1 }
 0x112   : > { %793 = vst.msk [vmem:[%s3809_s20 + $0x18] sm:$0xff] %vm789_vm5, %v786_v1  ;;  %v780_v8 = vadd.f32 %v779_v0, %v689_v2  ;;  %v867_v9 = vpop.f32.mrf.mxu0 }
 0x113   : > { %v2967_v4 = vpop.f32.mrf.mxu1 }
 0x114   : > { %792 = vst.msk [vmem:[%s3809_s20 + $0x10] sm:$0xff] %vm789_vm5, %v780_v8  ;;  %v985_v21 = vadd.f32 %v2967_v4, %v2957_v3 }
 0x115   : > { %v978_v10 = vpop.f32.mrf.mxu1  ;;  %v2960_v11 = vpop.f32.mrf.mxu0 }
 0x116   : > { %v979_v28 = vadd.f32 %v978_v10, %v867_v9 }
 0x117   : > { %v2970_v12 = vpop.f32.mrf.mxu1  ;;  %v887_v15 = vpop.f32.mrf.mxu0 }
 0x118   : > { %v997_v30 = vadd.f32 %v2970_v12, %v2960_v11 }
 0x119   : > { %v990_v16 = vpop.f32.mrf.mxu1  ;;  %v2977_v17 = vpop.f32.mrf.mxu0 }
 0x11a   : > { %v1080_v19 = vadd.f32 %v2977_v17, %v985_v21  ;;  %v991_v6 = vadd.f32 %v990_v16, %v887_v15 }
 0x11b   : > { %v2987_v18 = vpop.f32.mrf.mxu1  ;;  %v1072_v22 = vpop.f32.mrf.mxu0 }
 0x11c   : > { %v1073_v25 = vadd.f32 %v1072_v22, %v979_v28  ;;  %v1177_v7 = vadd.f32 %v2987_v18, %v1080_v19 }
 0x11d   : > { %v1168_v27 = vpop.f32.mrf.mxu1  ;;  %v2980_v20 = vpop.f32.mrf.mxu0 }
 0x11e   : > { %v1094_v13 = vadd.f32 %v2980_v20, %v997_v30  ;;  %v1169_v24 = vadd.f32 %v1168_v27, %v1073_v25 }
 0x11f   : > { %v2990_v29 = vpop.f32.mrf.mxu1  ;;  %v1086_v26 = vpop.f32.mrf.mxu0 }
 0x120   : > { %v1087_v31 = vadd.f32 %v1086_v26, %v991_v6  ;;  %v1193_v35 = vadd.f32 %v2990_v29, %v1094_v13 }
 0x121   : > { %v1184_v5 = vpop.f32.mrf.mxu1  ;;  %v2997_v14 = vpop.f32.mrf.mxu0 }
 0x122   : > { %v1276_v32 = vadd.f32 %v2997_v14, %v1177_v7  ;;  %v1185_v40 = vadd.f32 %v1184_v5, %v1087_v31 }
 0x123   : > { %v3007_v23 = vpop.f32.mrf.mxu1  ;;  %v1269_v33 = vpop.f32.mrf.mxu0 }
 0x124   : > { %v1367_v36 = vadd.f32 %v3007_v23, %v1276_v32  ;;  %v1270_v37 = vadd.f32 %v1269_v33, %v1169_v24 }
 0x125   : > { %v1360_v34 = vpop.f32.mrf.mxu1  ;;  %v3000_v38 = vpop.f32.mrf.mxu0 }
 0x126   : > { %2716 = vst.msk [vmem:[%s3809_s20 + $0x28] sm:$0xff] %vm789_vm5, %v1367_v36  ;;  %v1361_v41 = vadd.f32 %v1360_v34, %v1270_v37  ;;  %v1288_v42 = vadd.f32 %v3000_v38, %v1193_v35 }
 0x127   : > { %v3010_v39 = vpop.f32.mrf.mxu1  ;;  %v1281_v43 = vpop.f32.mrf.mxu0 }
 0x128   : > { %2715 = vst.msk [vmem:[%s3809_s20 + $0x20] sm:$0xff] %vm789_vm5, %v1361_v41  ;;  %v1379_v45 = vadd.f32 %v3010_v39, %v1288_v42  ;;  %v1282_v46 = vadd.f32 %v1281_v43, %v1185_v40 }
 0x129   : > { %v1372_v44 = vpop.f32.mrf.mxu1  ;;  %v3017_v47 = vpop.f32.mrf.mxu0 }
 0x12a   : > { %2718 = vst.msk [vmem:[%s3809_s20 + $0x38] sm:$0xff] %vm789_vm5, %v1379_v45  ;;  %v1373_v49 = vadd.f32 %v1372_v44, %v1282_v46 }
 0x12b   : > { %v3027_v48 = vpop.f32.mrf.mxu1  ;;  %v1480_v50 = vpop.f32.mrf.mxu0 }
 0x12c   : > { %2717 = vst.msk [vmem:[%s3809_s20 + $0x30] sm:$0xff] %vm789_vm5, %v1373_v49  ;;  %v1598_v58 = vadd.f32 %v3027_v48, %v3017_v47 }
 0x12d   : > { %v1591_v51 = vpop.f32.mrf.mxu1  ;;  %v3020_v52 = vpop.f32.mrf.mxu0 }
 0x12e   : > { %v1592_v61 = vadd.f32 %v1591_v51, %v1480_v50 }
 0x12f   : > { %v3030_v53 = vpop.f32.mrf.mxu1  ;;  %v1500_v54 = vpop.f32.mrf.mxu0 }
 0x130   : > { %v1610_v1 = vadd.f32 %v3030_v53, %v3020_v52 }
 0x131   : > { %v1603_v55 = vpop.f32.mrf.mxu1  ;;  %v3037_v56 = vpop.f32.mrf.mxu0 }
 0x132   : > { %v1693_v62 = vadd.f32 %v3037_v56, %v1598_v58  ;;  %v1604_v8 = vadd.f32 %v1603_v55, %v1500_v54 }
 0x133   : > { %v3047_v57 = vpop.f32.mrf.mxu1  ;;  %v1685_v59 = vpop.f32.mrf.mxu0 }
 0x134   : > { %v1686_v2 = vadd.f32 %v1685_v59, %v1592_v61  ;;  %v1790_v9 = vadd.f32 %v3047_v57, %v1693_v62 }
 0x135   : > { %v1781_v60 = vpop.f32.mrf.mxu1  ;;  %v3040_v63 = vpop.f32.mrf.mxu0 }
 0x136   : > { %v1707_v10 = vadd.f32 %v3040_v63, %v1610_v1  ;;  %v1782_v15 = vadd.f32 %v1781_v60, %v1686_v2 }
 0x137   : > { %v3050_v0 = vpop.f32.mrf.mxu1  ;;  %v1699_v3 = vpop.f32.mrf.mxu0 }
 0x138   : > { %v1700_v16 = vadd.f32 %v1699_v3, %v1604_v8  ;;  %v1806_v22 = vadd.f32 %v3050_v0, %v1707_v10 }
 0x139   : > { %v1797_v4 = vpop.f32.mrf.mxu1  ;;  %v3057_v11 = vpop.f32.mrf.mxu0 }
 0x13a   : > { %v1889_v17 = vadd.f32 %v3057_v11, %v1790_v9  ;;  %v1798_v29 = vadd.f32 %v1797_v4, %v1700_v16 }
 0x13b   : > { %v3067_v12 = vpop.f32.mrf.mxu1  ;;  %v1882_v18 = vpop.f32.mrf.mxu0 }
 0x13c   : > { %v1980_v27 = vadd.f32 %v3067_v12, %v1889_v17  ;;  %v1883_v28 = vadd.f32 %v1882_v18, %v1782_v15 }
 0x13d   : > { %v1973_v21 = vpop.f32.mrf.mxu1  ;;  %v3060_v19 = vpop.f32.mrf.mxu0 }
 0x13e   : > { %2730 = vst.msk [vmem:[%s3809_s20 + $0x48] sm:$0xff] %vm789_vm5, %v1980_v27  ;;  %v1974_v30 = vadd.f32 %v1973_v21, %v1883_v28  ;;  %v1901_v25 = vadd.f32 %v3060_v19, %v1806_v22 }
 0x13f   : > { %v3070_v20 = vpop.f32.mrf.mxu1  ;;  %v1894_v26 = vpop.f32.mrf.mxu0 }
 0x140   : > { %2729 = vst.msk [vmem:[%s3809_s20 + $0x40] sm:$0xff] %vm789_vm5, %v1974_v30  ;;  %v1992_v6 = vadd.f32 %v3070_v20, %v1901_v25  ;;  %v1895_v7 = vadd.f32 %v1894_v26, %v1798_v29 }
 0x141   : > { %v1985_v5 = vpop.f32.mrf.mxu1  ;;  %v3077_v13 = vpop.f32.mrf.mxu0 }
 0x142   : > { %2732 = vst.msk [vmem:[%s3809_s20 + $0x58] sm:$0xff] %vm789_vm5, %v1992_v6  ;;  %v1986_v23 = vadd.f32 %v1985_v5, %v1895_v7 }
 0x143   : > { %v3087_v14 = vpop.f32.mrf.mxu1  ;;  %v2073_v24 = vpop.f32.mrf.mxu0 }
 0x144   : > { %2731 = vst.msk [vmem:[%s3809_s20 + $0x50] sm:$0xff] %vm789_vm5, %v1986_v23  ;;  %v2191_v38 = vadd.f32 %v3087_v14, %v3077_v13 }
 0x145   : > { %v2184_v31 = vpop.f32.mrf.mxu1  ;;  %v3080_v32 = vpop.f32.mrf.mxu0 }
 0x146   : > { %v2185_v41 = vadd.f32 %v2184_v31, %v2073_v24 }
 0x147   : > { %v3090_v33 = vpop.f32.mrf.mxu1  ;;  %v2093_v34 = vpop.f32.mrf.mxu0 }
 0x148   : > { %v2203_v45 = vadd.f32 %v3090_v33, %v3080_v32 }
 0x149   : > { %v2196_v35 = vpop.f32.mrf.mxu1  ;;  %v3097_v36 = vpop.f32.mrf.mxu0 }
 0x14a   : > { %v2286_v42 = vadd.f32 %v3097_v36, %v2191_v38  ;;  %v2197_v49 = vadd.f32 %v2196_v35, %v2093_v34 }
 0x14b   : > { %v3107_v37 = vpop.f32.mrf.mxu1  ;;  %v2278_v39 = vpop.f32.mrf.mxu0 }
 0x14c   : > { %v2279_v46 = vadd.f32 %v2278_v39, %v2185_v41  ;;  %v2383_v50 = vadd.f32 %v3107_v37, %v2286_v42 }
 0x14d   : > { %v2374_v40 = vpop.f32.mrf.mxu1  ;;  %v3100_v43 = vpop.f32.mrf.mxu0 }
 0x14e   : > { %v2300_v51 = vadd.f32 %v3100_v43, %v2203_v45  ;;  %v2375_v54 = vadd.f32 %v2374_v40, %v2279_v46 }
 0x14f   : > { %v3110_v44 = vpop.f32.mrf.mxu1  ;;  %v2292_v47 = vpop.f32.mrf.mxu0 }
 0x150   : > { %v2293_v55 = vadd.f32 %v2292_v47, %v2197_v49  ;;  %v2399_v59 = vadd.f32 %v3110_v44, %v2300_v51 }
 0x151   : > { %v2390_v48 = vpop.f32.mrf.mxu1  ;;  %v3117_v52 = vpop.f32.mrf.mxu0 }
 0x152   : > { %v2482_v56 = vadd.f32 %v3117_v52, %v2383_v50  ;;  %v2391_v0 = vadd.f32 %v2390_v48, %v2293_v55 }
 0x153   : > { %v3127_v53 = vpop.f32.mrf.mxu1  ;;  %v2475_v57 = vpop.f32.mrf.mxu0 }
 0x154   : > { %v2573_v60 = vadd.f32 %v3127_v53, %v2482_v56  ;;  %v2476_v61 = vadd.f32 %v2475_v57, %v2375_v54 }
 0x155   : > { %v2566_v58 = vpop.f32.mrf.mxu1  ;;  %v3120_v62 = vpop.f32.mrf.mxu0 }
 0x156   : > { %2740 = vst.msk [vmem:[%s3809_s20 + $0x68] sm:$0xff] %vm789_vm5, %v2573_v60  ;;  %v2567_v1 = vadd.f32 %v2566_v58, %v2476_v61  ;;  %v2494_v2 = vadd.f32 %v3120_v62, %v2399_v59 }
 0x157   : > { %v3130_v63 = vpop.f32.mrf.mxu1  ;;  %v2487_v3 = vpop.f32.mrf.mxu0 }
 0x158   : > { %2739 = vst.msk [vmem:[%s3809_s20 + $0x60] sm:$0xff] %vm789_vm5, %v2567_v1  ;;  %v2585_v4 = vadd.f32 %v3130_v63, %v2494_v2  ;;  %v2488_v8 = vadd.f32 %v2487_v3, %v2391_v0 }
 0x159   : > { %v2578_v9 = vpop.f32.mrf.mxu1 }
 0x15a   : > { %2742 = vst.msk [vmem:[%s3809_s20 + $0x78] sm:$0xff] %vm789_vm5, %v2585_v4  ;;  %v2579_v10 = vadd.f32 %v2578_v9, %v2488_v8 }
 0x15c   : > { %2741 = vst.msk [vmem:[%s3809_s20 + $0x70] sm:$0xff] %vm789_vm5, %v2579_v10 }
 0x15d PF: > { %s14_s11 = sadd.s32 1, %s3268_s11   ;;  %s3874_s6 = smov %s3252_s7 }
 0x15e   : > { %p11_p8 = scmp.ge.s32.totalorder %s14_s11, 4   ;;  %s3875_s7 = smov %s3256_s8 }
 0x15f   : > { %s3876_s8 = smov %s3334_s18  ;;  %s3877_s9 = smov %s3264_s10 }
 0x160   : > { %s3878_s10 = smov %s3880_s13  ;;  %13 = sbr.rel (!%p11_p8) target bundleno = 4 (0x4), region = 74 }
 0x165   :  { %2620 = vsyncpa [#allocation3], 1 }
 0x166   :  { %2622 = vsyncpa [#allocation3 + $0x1], 1 }

</bundles_post_ra>
